<compile_context>
chip_gen: v6e
topology: v6e:2x2x1
jax: 0.10.0
libtpu: 0.0.40
codegen_flags: <defaults>
</compile_context>

<pallas_src>
import jax
import jax.numpy as jnp
from jax.experimental import pallas as pl
from jax.experimental.pallas import tpu as pltpu


# ---------------------------------------------------------------------------
# Pallas kernel 1: transposed conv-as-matmul, bias folded into K, fused ReLU
#   out[c, m] = relu( sum_k w[c, k] * p[k, m] )
# ---------------------------------------------------------------------------
def _convT_kernel(w_ref, p_ref, o_ref):
    acc = jnp.dot(w_ref[...], p_ref[...], preferred_element_type=jnp.float32)
    o_ref[...] = jnp.maximum(acc, 0.0).astype(o_ref.dtype)


def conv_as_matmul_T(w_pad, pT_pad, *, m_block, parallel):
    """w_pad: (Cp, Kp) bf16, pT_pad: (Kp, M) bf16 -> (Cp, M) f32 = relu(w @ p)."""
    Cp, Kp = w_pad.shape
    Kp2, M = pT_pad.shape
    assert Kp == Kp2 and M % m_block == 0
    n_m = M // m_block
    flops = 2 * Cp * Kp * M
    bytes_accessed = int(w_pad.size * 2 + pT_pad.size * 2 + Cp * M * 4)
    return pl.pallas_call(
        _convT_kernel,
        out_shape=jax.ShapeDtypeStruct((Cp, M), jnp.float32),
        grid=(n_m,),
        in_specs=[
            pl.BlockSpec((Cp, Kp), lambda i: (0, 0)),        # weights pinned
            pl.BlockSpec((Kp, m_block), lambda i: (0, i)),   # patch tile (lane dim tiled)
        ],
        out_specs=pl.BlockSpec((Cp, m_block), lambda i: (0, i)),
        compiler_params=pltpu.CompilerParams(
            dimension_semantics=("parallel",) if parallel else ("arbitrary",)),
        cost_estimate=pl.CostEstimate(flops=flops, transcendentals=0,
                                      bytes_accessed=bytes_accessed),
    )(w_pad, pT_pad)


# ---------------------------------------------------------------------------
# Pallas kernel 2: fused FC stack  fc1 -> relu -> fc2 -> relu -> fc3
# Intermediates (padded to 128 lanes) never leave the kernel.
# ---------------------------------------------------------------------------
def _fc_stack_kernel(x_ref, w1_ref, b1_ref, w2_ref, b2_ref, w3_ref, b3_ref, o_ref):
    h = jnp.dot(x_ref[...], w1_ref[...], preferred_element_type=jnp.float32)
    h = jnp.maximum(h + b1_ref[...], 0.0)
    h = jnp.dot(h.astype(jnp.bfloat16), w2_ref[...], preferred_element_type=jnp.float32)
    h = jnp.maximum(h + b2_ref[...], 0.0)
    o = jnp.dot(h.astype(jnp.bfloat16), w3_ref[...], preferred_element_type=jnp.float32)
    o_ref[...] = (o + b3_ref[...]).astype(o_ref.dtype)


def fc_stack(x_bf16, w1, b1, w2, b2, w3, b3):
    Nb, K1 = x_bf16.shape
    H1 = w1.shape[1]
    H2 = w2.shape[1]
    NO = w3.shape[1]
    flops = 2 * Nb * (K1 * H1 + H1 * H2 + H2 * NO)
    bytes_accessed = int(x_bf16.size * 2 + (w1.size + w2.size + w3.size) * 2 +
                         (b1.size + b2.size + b3.size) * 4 + Nb * NO * 4)
    args = (x_bf16, w1, b1, w2, b2, w3, b3)
    in_specs = [pl.BlockSpec(a.shape, lambda i: (0, 0)) for a in args]
    return pl.pallas_call(
        _fc_stack_kernel,
        out_shape=jax.ShapeDtypeStruct((Nb, NO), jnp.float32),
        grid=(1,),
        in_specs=in_specs,
        out_specs=pl.BlockSpec((Nb, NO), lambda i: (0, 0)),
        compiler_params=pltpu.CompilerParams(dimension_semantics=("arbitrary",)),
        cost_estimate=pl.CostEstimate(flops=flops, transcendentals=0,
                                      bytes_accessed=bytes_accessed),
    )(*args)


# ---------------------------------------------------------------------------
# JAX glue: transposed im2col for dilated "valid" convolution (NHWC input)
# K ordering = (Cin, ky, kx)  == PyTorch weight.reshape(Cout, -1) ordering.
# M ordering = (n, ho, wo)    (batch-major -> grid over batch tiles cleanly).
# ---------------------------------------------------------------------------
def _im2col_T(x_nhwc, kh, kw, dil):
    N, H, W, C = x_nhwc.shape
    Ho = H - dil * (kh - 1)
    Wo = W - dil * (kw - 1)
    slabs = []
    for ky in range(kh):
        for kx in range(kw):
            slabs.append(x_nhwc[:, ky * dil:ky * dil + Ho,
                                kx * dil:kx * dil + Wo, :])
    arr = jnp.stack(slabs, axis=0)                 # (kh*kw, N, Ho, Wo, C)
    arr = jnp.transpose(arr, (4, 0, 1, 2, 3))      # (C, kh*kw, N, Ho, Wo)
    return arr.reshape(C * kh * kw, N * Ho * Wo), Ho, Wo


def _pad_patchesT(pT, k_pad):
    """Pad K -> k_pad; row K holds ones so the bias can ride along the matmul."""
    K, M = pT.shape
    return jnp.concatenate(
        [pT, jnp.ones((1, M), pT.dtype), jnp.zeros((k_pad - K - 1, M), pT.dtype)],
        axis=0)


def _pad_conv_weight(w_oihw, b, k_pad, c_pad):
    """OIHW weight -> (c_pad, k_pad) with the bias in column K, zeros elsewhere."""
    Cout = w_oihw.shape[0]
    K = w_oihw.shape[1] * w_oihw.shape[2] * w_oihw.shape[3]
    wf = w_oihw.reshape(Cout, K)
    wf = jnp.concatenate(
        [wf, b[:, None], jnp.zeros((Cout, k_pad - K - 1), wf.dtype)], axis=1)
    if c_pad > Cout:
        wf = jnp.concatenate([wf, jnp.zeros((c_pad - Cout, k_pad), wf.dtype)], axis=0)
    return wf


# ---------------------------------------------------------------------------
# Parameters (deterministic synthetic init, PyTorch-like shapes)
# ---------------------------------------------------------------------------
def init_params(key):
    ks = jax.random.split(key, 10)

    def w(k, shape, fan_in):
        return (jax.random.normal(k, shape, jnp.float32) /
                jnp.sqrt(jnp.float32(fan_in)))

    return {
        "conv1_w": w(ks[0], (6, 3, 9, 9), 3 * 9 * 9),   # OIHW
        "conv1_b": w(ks[1], (6,), 3 * 9 * 9),
        "conv2_w": w(ks[2], (16, 6, 3, 3), 6 * 3 * 3),
        "conv2_b": w(ks[3], (16,), 6 * 3 * 3),
        "fc1_w": w(ks[4], (2304, 120), 2304),           # stored as (in, out) == torch W.T
        "fc1_b": w(ks[5], (120,), 2304),
        "fc2_w": w(ks[6], (120, 84), 120),
        "fc2_b": w(ks[7], (84,), 120),
        "fc3_w": w(ks[8], (84, 10), 84),
        "fc3_b": w(ks[9], (10,), 84),
    }


# ---------------------------------------------------------------------------
# Forward pass
# ---------------------------------------------------------------------------
def dilated_cnn_forward(x_nchw, params):
    x = jnp.transpose(x_nchw, (0, 2, 3, 1)).astype(jnp.float32)  # NCHW -> NHWC
    N = x.shape[0]

    # --- conv1: 3 -> 6, k=9, dilation=2, valid (32x32 -> 16x16) ---------------
    p1T, H1, W1 = _im2col_T(x, 9, 9, 2)                               # (243, N*256)
    p1T = _pad_patchesT(p1T, 256).astype(jnp.bfloat16)                # (256, N*256)
    w1 = _pad_conv_weight(params["conv1_w"], params["conv1_b"],
                          256, 8).astype(jnp.bfloat16)                # (8, 256)
    y1T = conv_as_matmul_T(w1, p1T, m_block=H1 * W1, parallel=True)   # (8, N*256) f32
    y1 = jnp.transpose(y1T[:6].reshape(6, N, H1, W1), (1, 2, 3, 0))   # (N,16,16,6) NHWC

    # --- conv2: 6 -> 16, k=3, dilation=2, valid (16x16 -> 12x12) --------------
    p2T, H2, W2 = _im2col_T(y1, 3, 3, 2)                              # (54, N*144)
    p2T = _pad_patchesT(p2T, 64).astype(jnp.bfloat16)                 # (64, N*144)
    w2 = _pad_conv_weight(params["conv2_w"], params["conv2_b"],
                          64, 16).astype(jnp.bfloat16)                # (16, 64)
    y2T = conv_as_matmul_T(w2, p2T, m_block=N * H2 * W2, parallel=False)  # (16, N*144)

    # --- flatten exactly like torch's x.view(-1, 2304) on NCHW ----------------
    flat = jnp.transpose(y2T.reshape(16, N, H2, W2),
                         (1, 0, 2, 3)).reshape(N, 16 * H2 * W2)       # (N, 2304)

    # --- fused FC stack (hidden widths padded to 128 lanes) -------------------
    HP1, HP2 = 128, 128
    w1f = jnp.pad(params["fc1_w"], ((0, 0), (0, HP1 - 120))).astype(jnp.bfloat16)
    b1f = jnp.pad(params["fc1_b"], (0, HP1 - 120)).reshape(1, HP1).astype(jnp.float32)
    w2f = jnp.pad(params["fc2_w"], ((0, HP1 - 120), (0, HP2 - 84))).astype(jnp.bfloat16)
    b2f = jnp.pad(params["fc2_b"], (0, HP2 - 84)).reshape(1, HP2).astype(jnp.float32)
    w3f = jnp.pad(params["fc3_w"], ((0, HP2 - 84), (0, 0))).astype(jnp.bfloat16)
    b3f = params["fc3_b"].reshape(1, 10).astype(jnp.float32)

    out = fc_stack(flat.astype(jnp.bfloat16), w1f, b1f, w2f, b2f, w3f, b3f)
    return out                                                        # (N, 10) f32


if __name__ == "__main__":
    key = jax.random.PRNGKey(0)
    k_x, k_p = jax.random.split(key)

    # Spatial size dictated by the module: 32x32x3 -> conv stack -> 2304 features.
    x = jax.random.normal(k_x, (2, 3, 32, 32), jnp.float32)
    params = init_params(k_p)

    fwd = jax.jit(dilated_cnn_forward)
    out = fwd(x, params)
    jax.block_until_ready(out)

    assert out.shape == (2, 10), out.shape
    assert out.dtype == jnp.float32
    print("KERNEL_OK")
</pallas_src>

<mosaic_0001>
module attributes {stable_mosaic.version = 11 : i64} {
  func.func @_convT_kernel(%arg0: i32, %arg1: memref<8x256xbf16, #tpu.memory_space<vmem>>, %arg2: memref<256x256xbf16, #tpu.memory_space<vmem>>, %arg3: memref<8x256xf32, #tpu.memory_space<vmem>>) attributes {dimension_semantics = [#tpu.dimension_semantics<parallel>], iteration_bounds = array<i64: 2>, scalar_prefetch = 0 : i64, scratch_operands = 0 : i64, tpu.core_type = #tpu.core_type<tc>, window_params = [{pipeline_mode = #tpu.pipeline_mode<synchronous>, transform_indices = @transform_0, window_bounds = array<i64: 8, 256>}, {transform_indices = @transform_1, window_bounds = array<i64: 256, 256>}, {transform_indices = @transform_2, window_bounds = array<i64: 8, 256>}]} {
    %c0 = arith.constant 0 : index
    %c0_0 = arith.constant 0 : index
    %0 = vector.load %arg1[%c0, %c0_0] : memref<8x256xbf16, #tpu.memory_space<vmem>>, vector<8x256xbf16>
    %c0_1 = arith.constant 0 : index
    %c0_2 = arith.constant 0 : index
    %1 = vector.load %arg2[%c0_1, %c0_2] : memref<256x256xbf16, #tpu.memory_space<vmem>>, vector<256x256xbf16>
    %cst = arith.constant dense<0.000000e+00> : vector<8x256xf32>
    %2 = tpu.matmul %0, %1, %cst {dimension_numbers = #tpu.dot_dimension_numbers<[1], [0], [0], [1], [0, 0, 1, 1], [], []>} : vector<8x256xbf16>, vector<256x256xbf16>, vector<8x256xf32> -> vector<8x256xf32>
    %cst_3 = arith.constant 0.000000e+00 : f32
    %3 = vector.broadcast %cst_3 : f32 to vector<8x256xf32>
    %4 = arith.maximumf %2, %3 : vector<8x256xf32>
    %c0_4 = arith.constant 0 : index
    %c0_5 = arith.constant 0 : index
    %5 = vector.load %arg3[%c0_4, %c0_5] : memref<8x256xf32, #tpu.memory_space<vmem>>, vector<8x256xf32>
    tpu.vector_store %arg3[%c0_4, %c0_5], %4 {strides = array<i32>} : memref<8x256xf32, #tpu.memory_space<vmem>>, vector<8x256xf32>,
    return
  }
  func.func @transform_0(%arg0: i32) -> (i32, i32) {
    %c0_i32 = arith.constant 0 : i32
    %c0_i32_0 = arith.constant 0 : i32
    %c0_i32_1 = arith.constant 0 : i32
    return %c0_i32, %c0_i32_0 : i32, i32
  }
  func.func @transform_1(%arg0: i32) -> (i32, i32) {
    %c0_i32 = arith.constant 0 : i32
    %c0_i32_0 = arith.constant 0 : i32
    return %c0_i32, %arg0 : i32, i32
  }
  func.func @transform_2(%arg0: i32) -> (i32, i32) {
    %c0_i32 = arith.constant 0 : i32
    %c0_i32_0 = arith.constant 0 : i32
    return %c0_i32, %arg0 : i32, i32
  }
}

module attributes {stable_mosaic.version = 11 : i64} {
  func.func @_convT_kernel(%arg0: i32, %arg1: memref<16x64xbf16, #tpu.memory_space<vmem>>, %arg2: memref<64x288xbf16, #tpu.memory_space<vmem>>, %arg3: memref<16x288xf32, #tpu.memory_space<vmem>>) attributes {dimension_semantics = [#tpu.dimension_semantics<arbitrary>], iteration_bounds = array<i64: 1>, scalar_prefetch = 0 : i64, scratch_operands = 0 : i64, tpu.core_type = #tpu.core_type<tc>, window_params = [{pipeline_mode = #tpu.pipeline_mode<synchronous>, transform_indices = @transform_0, window_bounds = array<i64: 16, 64>}, {transform_indices = @transform_1, window_bounds = array<i64: 64, 288>}, {transform_indices = @transform_2, window_bounds = array<i64: 16, 288>}]} {
    %c0 = arith.constant 0 : index
    %c0_0 = arith.constant 0 : index
    %0 = vector.load %arg1[%c0, %c0_0] : memref<16x64xbf16, #tpu.memory_space<vmem>>, vector<16x64xbf16>
    %c0_1 = arith.constant 0 : index
    %c0_2 = arith.constant 0 : index
    %1 = vector.load %arg2[%c0_1, %c0_2] : memref<64x288xbf16, #tpu.memory_space<vmem>>, vector<64x288xbf16>
    %cst = arith.constant dense<0.000000e+00> : vector<16x288xf32>
    %2 = tpu.matmul %0, %1, %cst {dimension_numbers = #tpu.dot_dimension_numbers<[1], [0], [0], [1], [0, 0, 1, 1], [], []>} : vector<16x64xbf16>, vector<64x288xbf16>, vector<16x288xf32> -> vector<16x288xf32>
    %cst_3 = arith.constant 0.000000e+00 : f32
    %3 = vector.broadcast %cst_3 : f32 to vector<16x288xf32>
    %4 = arith.maximumf %2, %3 : vector<16x288xf32>
    %c0_4 = arith.constant 0 : index
    %c0_5 = arith.constant 0 : index
    %5 = vector.load %arg3[%c0_4, %c0_5] : memref<16x288xf32, #tpu.memory_space<vmem>>, vector<16x288xf32>
    tpu.vector_store %arg3[%c0_4, %c0_5], %4 {strides = array<i32>} : memref<16x288xf32, #tpu.memory_space<vmem>>, vector<16x288xf32>,
    return
  }
  func.func @transform_0(%arg0: i32) -> (i32, i32) {
    %c0_i32 = arith.constant 0 : i32
    %c0_i32_0 = arith.constant 0 : i32
    %c0_i32_1 = arith.constant 0 : i32
    return %c0_i32, %c0_i32_0 : i32, i32
  }
  func.func @transform_1(%arg0: i32) -> (i32, i32) {
    %c0_i32 = arith.constant 0 : i32
    %c0_i32_0 = arith.constant 0 : i32
    return %c0_i32, %arg0 : i32, i32
  }
  func.func @transform_2(%arg0: i32) -> (i32, i32) {
    %c0_i32 = arith.constant 0 : i32
    %c0_i32_0 = arith.constant 0 : i32
    return %c0_i32, %arg0 : i32, i32
  }
}

module attributes {stable_mosaic.version = 11 : i64} {
  func.func @_fc_stack_kernel(%arg0: i32, %arg1: memref<2x2304xbf16, #tpu.memory_space<vmem>>, %arg2: memref<2304x128xbf16, #tpu.memory_space<vmem>>, %arg3: memref<1x128xf32, #tpu.memory_space<vmem>>, %arg4: memref<128x128xbf16, #tpu.memory_space<vmem>>, %arg5: memref<1x128xf32, #tpu.memory_space<vmem>>, %arg6: memref<128x10xbf16, #tpu.memory_space<vmem>>, %arg7: memref<1x10xf32, #tpu.memory_space<vmem>>, %arg8: memref<2x10xf32, #tpu.memory_space<vmem>>) attributes {dimension_semantics = [#tpu.dimension_semantics<arbitrary>], iteration_bounds = array<i64: 1>, scalar_prefetch = 0 : i64, scratch_operands = 0 : i64, tpu.core_type = #tpu.core_type<tc>, window_params = [{pipeline_mode = #tpu.pipeline_mode<synchronous>, transform_indices = @transform_0, window_bounds = array<i64: 2, 2304>}, {pipeline_mode = #tpu.pipeline_mode<synchronous>, transform_indices = @transform_1, window_bounds = array<i64: 2304, 128>}, {pipeline_mode = #tpu.pipeline_mode<synchronous>, transform_indices = @transform_2, window_bounds = array<i64: 1, 128>}, {pipeline_mode = #tpu.pipeline_mode<synchronous>, transform_indices = @transform_3, window_bounds = array<i64: 128, 128>}, {pipeline_mode = #tpu.pipeline_mode<synchronous>, transform_indices = @transform_4, window_bounds = array<i64: 1, 128>}, {pipeline_mode = #tpu.pipeline_mode<synchronous>, transform_indices = @transform_5, window_bounds = array<i64: 128, 10>}, {pipeline_mode = #tpu.pipeline_mode<synchronous>, transform_indices = @transform_6, window_bounds = array<i64: 1, 10>}, {pipeline_mode = #tpu.pipeline_mode<synchronous>, transform_indices = @transform_7, window_bounds = array<i64: 2, 10>}]} {
    %c0 = arith.constant 0 : index
    %c0_0 = arith.constant 0 : index
    %0 = vector.load %arg1[%c0, %c0_0] : memref<2x2304xbf16, #tpu.memory_space<vmem>>, vector<2x2304xbf16>
    %c0_1 = arith.constant 0 : index
    %c0_2 = arith.constant 0 : index
    %1 = vector.load %arg2[%c0_1, %c0_2] : memref<2304x128xbf16, #tpu.memory_space<vmem>>, vector<2304x128xbf16>
    %cst = arith.constant dense<0.000000e+00> : vector<2x128xf32>
    %2 = tpu.matmul %0, %1, %cst {dimension_numbers = #tpu.dot_dimension_numbers<[1], [0], [0], [1], [0, 0, 1, 1], [], []>} : vector<2x2304xbf16>, vector<2304x128xbf16>, vector<2x128xf32> -> vector<2x128xf32>
    %c0_3 = arith.constant 0 : index
    %c0_4 = arith.constant 0 : index
    %3 = vector.load %arg3[%c0_3, %c0_4] : memref<1x128xf32, #tpu.memory_space<vmem>>, vector<1x128xf32>
    %4 = vector.broadcast %3 : vector<1x128xf32> to vector<2x128xf32>
    %5 = arith.addf %2, %4 : vector<2x128xf32>
    %cst_5 = arith.constant 0.000000e+00 : f32
    %6 = vector.broadcast %cst_5 : f32 to vector<2x128xf32>
    %7 = arith.maximumf %5, %6 : vector<2x128xf32>
    %8 = arith.truncf %7 : vector<2x128xf32> to vector<2x128xbf16>
    %c0_6 = arith.constant 0 : index
    %c0_7 = arith.constant 0 : index
    %9 = vector.load %arg4[%c0_6, %c0_7] : memref<128x128xbf16, #tpu.memory_space<vmem>>, vector<128x128xbf16>
    %cst_8 = arith.constant dense<0.000000e+00> : vector<2x128xf32>
    %10 = tpu.matmul %8, %9, %cst_8 {dimension_numbers = #tpu.dot_dimension_numbers<[1], [0], [0], [1], [0, 0, 1, 1], [], []>} : vector<2x128xbf16>, vector<128x128xbf16>, vector<2x128xf32> -> vector<2x128xf32>
    %c0_9 = arith.constant 0 : index
    %c0_10 = arith.constant 0 : index
    %11 = vector.load %arg5[%c0_9, %c0_10] : memref<1x128xf32, #tpu.memory_space<vmem>>, vector<1x128xf32>
    %12 = vector.broadcast %11 : vector<1x128xf32> to vector<2x128xf32>
    %13 = arith.addf %10, %12 : vector<2x128xf32>
    %cst_11 = arith.constant 0.000000e+00 : f32
    %14 = vector.broadcast %cst_11 : f32 to vector<2x128xf32>
    %15 = arith.maximumf %13, %14 : vector<2x128xf32>
    %16 = arith.truncf %15 : vector<2x128xf32> to vector<2x128xbf16>
    %c0_12 = arith.constant 0 : index
    %c0_13 = arith.constant 0 : index
    %17 = vector.load %arg6[%c0_12, %c0_13] : memref<128x10xbf16, #tpu.memory_space<vmem>>, vector<128x10xbf16>
    %cst_14 = arith.constant dense<0.000000e+00> : vector<2x10xf32>
    %18 = tpu.matmul %16, %17, %cst_14 {dimension_numbers = #tpu.dot_dimension_numbers<[1], [0], [0], [1], [0, 0, 1, 1], [], []>} : vector<2x128xbf16>, vector<128x10xbf16>, vector<2x10xf32> -> vector<2x10xf32>
    %c0_15 = arith.constant 0 : index
    %c0_16 = arith.constant 0 : index
    %19 = vector.load %arg7[%c0_15, %c0_16] : memref<1x10xf32, #tpu.memory_space<vmem>>, vector<1x10xf32>
    %20 = vector.broadcast %19 : vector<1x10xf32> to vector<2x10xf32>
    %21 = arith.addf %18, %20 : vector<2x10xf32>
    %c0_17 = arith.constant 0 : index
    %c0_18 = arith.constant 0 : index
    %22 = vector.load %arg8[%c0_17, %c0_18] : memref<2x10xf32, #tpu.memory_space<vmem>>, vector<2x10xf32>
    tpu.vector_store %arg8[%c0_17, %c0_18], %21 {strides = array<i32>} : memref<2x10xf32, #tpu.memory_space<vmem>>, vector<2x10xf32>,
    return
  }
  func.func @transform_0(%arg0: i32) -> (i32, i32) {
    %c0_i32 = arith.constant 0 : i32
    %c0_i32_0 = arith.constant 0 : i32
    %c0_i32_1 = arith.constant 0 : i32
    return %c0_i32, %c0_i32_0 : i32, i32
  }
  func.func @transform_1(%arg0: i32) -> (i32, i32) {
    %c0_i32 = arith.constant 0 : i32
    %c0_i32_0 = arith.constant 0 : i32
    %c0_i32_1 = arith.constant 0 : i32
    return %c0_i32, %c0_i32_0 : i32, i32
  }
  func.func @transform_2(%arg0: i32) -> (i32, i32) {
    %c0_i32 = arith.constant 0 : i32
    %c0_i32_0 = arith.constant 0 : i32
    %c0_i32_1 = arith.constant 0 : i32
    return %c0_i32, %c0_i32_0 : i32, i32
  }
  func.func @transform_3(%arg0: i32) -> (i32, i32) {
    %c0_i32 = arith.constant 0 : i32
    %c0_i32_0 = arith.constant 0 : i32
    %c0_i32_1 = arith.constant 0 : i32
    return %c0_i32, %c0_i32_0 : i32, i32
  }
  func.func @transform_4(%arg0: i32) -> (i32, i32) {
    %c0_i32 = arith.constant 0 : i32
    %c0_i32_0 = arith.constant 0 : i32
    %c0_i32_1 = arith.constant 0 : i32
    return %c0_i32, %c0_i32_0 : i32, i32
  }
  func.func @transform_5(%arg0: i32) -> (i32, i32) {
    %c0_i32 = arith.constant 0 : i32
    %c0_i32_0 = arith.constant 0 : i32
    %c0_i32_1 = arith.constant 0 : i32
    return %c0_i32, %c0_i32_0 : i32, i32
  }
  func.func @transform_6(%arg0: i32) -> (i32, i32) {
    %c0_i32 = arith.constant 0 : i32
    %c0_i32_0 = arith.constant 0 : i32
    %c0_i32_1 = arith.constant 0 : i32
    return %c0_i32, %c0_i32_0 : i32, i32
  }
  func.func @transform_7(%arg0: i32) -> (i32, i32) {
    %c0_i32 = arith.constant 0 : i32
    %c0_i32_0 = arith.constant 0 : i32
    %c0_i32_1 = arith.constant 0 : i32
    return %c0_i32, %c0_i32_0 : i32, i32
  }
}

</mosaic_0001>

<bundles_post_ra>
// kernel: dilated_cnn_forward.3
= control target key start
LH: loop header
LB: loop body
LE: loop exit
PB: predicated region body
PF: predicated region fallthrough
CT: control target
= control target key end

     0   :  { %s774_s9 = smov 0   ;;  %s776_s10 = smov 0   ;;  %s937_s0 = inlined_call_operand.vmem [shape: bf16[8,256], index: 0, kind: input, shape index: {}]   ;;  %s938_s1 = inlined_call_operand.vmem [shape: bf16[256,512], index: 1, kind: input, shape index: {}]   ;;  %s939_s2 = inlined_call_operand.vmem [shape: f32[8,512], index: 2, kind: output, shape index: {}]  }
   0x1   :  { %s778_s11 = smov 0  }
   0x2 LB: > { %s613_s12 = sadd.s32 4294967295, %s757_s11   ;;  %s791_s13 = sadd.s32 1, %s757_s11   ;;  %s757_s11 = sphi %s778_s11, %s942_s11   ;;  %s753_s10 = sphi %s776_s10, %s941_s10   ;;  %s749_s9 = sphi %s774_s9, %s940_s9  }
   0x3   : > { %s37_s14 = ssub.s32 %s757_s11, %s791_s13  ;;  %s40_s15 = sadd.s32 1, %s753_s10 }
   0x4   : > { %p38_p0 = scmp.eq.s32.totalorder %s37_s14, 0  ;;  %p47_p1 = scmp.ne.s32.totalorder %s753_s10, %s749_s9 }
   0x5   : > { %p48_p2 = scmp.eq.s32.totalorder %s757_s11, 0  ;;  %p616_p4 = scmp.ge.s32.totalorder %s757_s11, 2 }
   0x6   : > { %s800_s16 = scalar_select %p38_p0, %s753_s10, %s40_s15  }
   0x7   : > { %p49_p3 = por %p48_p2, %p47_p1  ;;  %102 = sbr.rel (%p616_p4) target bundleno = 32 (0x20), region = 20 }
   0xc   : > { %105 = sbr.rel (!%p49_p3) target bundleno = 32 (0x20), region = 24  ;;  %s107_s17 = sand.u32 (%p49_p3), 1, %s753_s10  }
   0xd   : > { %s660_s18 = sshll.u32 (%p49_p3), %s757_s11, 3  ;;  %s617_s19 = sshll.u32 (%p49_p3), %s107_s17, 8 }
   0xe   : > { %s808_s22 = scalar_lea.vmem (%p49_p3), %s938_s1, %s660_s18  ;;  %s813_s23 = scalar_lea.vmem (%p49_p3), [#allocation2], %s617_s19 }
   0xf   : > { %v203_v0 = vld [vmem:[%s808_s22] sm:$0xff] (%p49_p3)  ;;  %v205_v1 = vld [vmem:[%s808_s22 + $0x10] sm:$0xff] (%p49_p3) }
  0x10   : > { %v207_v2 = vld [vmem:[%s808_s22 + $0x20] sm:$0xff] (%p49_p3)  ;;  %204 = vst [vmem:[%s813_s23] sm:$0xff] (%p49_p3), %v203_v0  ;;  %206 = vst [vmem:[%s813_s23 + $0x8] sm:$0xff] (%p49_p3), %v205_v1  ;;  %v209_v3 = vld [vmem:[%s808_s22 + $0x30] sm:$0xff] (%p49_p3) }
  0x11   : > { %208 = vst [vmem:[%s813_s23 + $0x10] sm:$0xff] %v207_v2  ;;  %v211_v4 = vld [vmem:[%s808_s22 + $0x40] sm:$0xff]  ;;  %v213_v5 = vld [vmem:[%s808_s22 + $0x50] sm:$0xff]  ;;  %210 = vst [vmem:[%s813_s23 + $0x18] sm:$0xff] %v209_v3 }
  0x12   : > { %212 = vst [vmem:[%s813_s23 + $0x20] sm:$0xff] %v211_v4  ;;  %214 = vst [vmem:[%s813_s23 + $0x28] sm:$0xff] %v213_v5  ;;  %v215_v6 = vld [vmem:[%s808_s22 + $0x60] sm:$0xff]  ;;  %v217_v7 = vld [vmem:[%s808_s22 + $0x70] sm:$0xff] }
  0x13   : > { %v219_v8 = vld [vmem:[%s808_s22 + $0x80] sm:$0xff]  ;;  %216 = vst [vmem:[%s813_s23 + $0x30] sm:$0xff] %v215_v6  ;;  %218 = vst [vmem:[%s813_s23 + $0x38] sm:$0xff] %v217_v7  ;;  %v221_v9 = vld [vmem:[%s808_s22 + $0x90] sm:$0xff] }
  0x14   : > { %220 = vst [vmem:[%s813_s23 + $0x40] sm:$0xff] %v219_v8  ;;  %v223_v10 = vld [vmem:[%s808_s22 + $0xa0] sm:$0xff]  ;;  %v225_v11 = vld [vmem:[%s808_s22 + $0xb0] sm:$0xff]  ;;  %222 = vst [vmem:[%s813_s23 + $0x48] sm:$0xff] %v221_v9 }
  0x15   : > { %224 = vst [vmem:[%s813_s23 + $0x50] sm:$0xff] %v223_v10  ;;  %226 = vst [vmem:[%s813_s23 + $0x58] sm:$0xff] %v225_v11  ;;  %v227_v12 = vld [vmem:[%s808_s22 + $0xc0] sm:$0xff]  ;;  %v229_v13 = vld [vmem:[%s808_s22 + $0xd0] sm:$0xff] }
  0x16   : > { %v231_v14 = vld [vmem:[%s808_s22 + $0xe0] sm:$0xff]  ;;  %228 = vst [vmem:[%s813_s23 + $0x60] sm:$0xff] %v227_v12  ;;  %230 = vst [vmem:[%s813_s23 + $0x68] sm:$0xff] %v229_v13  ;;  %v233_v15 = vld [vmem:[%s808_s22 + $0xf0] sm:$0xff] }
  0x17   : > { %232 = vst [vmem:[%s813_s23 + $0x70] sm:$0xff] %v231_v14  ;;  %v235_v16 = vld [vmem:[%s808_s22 + $0x100] sm:$0xff]  ;;  %v237_v17 = vld [vmem:[%s808_s22 + $0x110] sm:$0xff]  ;;  %234 = vst [vmem:[%s813_s23 + $0x78] sm:$0xff] %v233_v15 }
  0x18   : > { %236 = vst [vmem:[%s813_s23 + $0x80] sm:$0xff] %v235_v16  ;;  %238 = vst [vmem:[%s813_s23 + $0x88] sm:$0xff] %v237_v17  ;;  %v239_v18 = vld [vmem:[%s808_s22 + $0x120] sm:$0xff]  ;;  %v241_v19 = vld [vmem:[%s808_s22 + $0x130] sm:$0xff] }
  0x19   : > { %v243_v20 = vld [vmem:[%s808_s22 + $0x140] sm:$0xff]  ;;  %240 = vst [vmem:[%s813_s23 + $0x90] sm:$0xff] %v239_v18  ;;  %242 = vst [vmem:[%s813_s23 + $0x98] sm:$0xff] %v241_v19  ;;  %v245_v21 = vld [vmem:[%s808_s22 + $0x150] sm:$0xff] }
  0x1a   : > { %244 = vst [vmem:[%s813_s23 + $0xa0] sm:$0xff] %v243_v20  ;;  %v247_v22 = vld [vmem:[%s808_s22 + $0x160] sm:$0xff]  ;;  %v249_v23 = vld [vmem:[%s808_s22 + $0x170] sm:$0xff]  ;;  %246 = vst [vmem:[%s813_s23 + $0xa8] sm:$0xff] %v245_v21 }
  0x1b   : > { %248 = vst [vmem:[%s813_s23 + $0xb0] sm:$0xff] %v247_v22  ;;  %250 = vst [vmem:[%s813_s23 + $0xb8] sm:$0xff] %v249_v23  ;;  %v251_v24 = vld [vmem:[%s808_s22 + $0x180] sm:$0xff]  ;;  %v253_v25 = vld [vmem:[%s808_s22 + $0x190] sm:$0xff] }
  0x1c   : > { %v255_v26 = vld [vmem:[%s808_s22 + $0x1a0] sm:$0xff]  ;;  %252 = vst [vmem:[%s813_s23 + $0xc0] sm:$0xff] %v251_v24  ;;  %254 = vst [vmem:[%s813_s23 + $0xc8] sm:$0xff] %v253_v25  ;;  %v257_v27 = vld [vmem:[%s808_s22 + $0x1b0] sm:$0xff] }
  0x1d   : > { %256 = vst [vmem:[%s813_s23 + $0xd0] sm:$0xff] %v255_v26  ;;  %v259_v28 = vld [vmem:[%s808_s22 + $0x1c0] sm:$0xff]  ;;  %v261_v29 = vld [vmem:[%s808_s22 + $0x1d0] sm:$0xff]  ;;  %258 = vst [vmem:[%s813_s23 + $0xd8] sm:$0xff] %v257_v27 }
  0x1e   : > { %260 = vst [vmem:[%s813_s23 + $0xe0] sm:$0xff] %v259_v28  ;;  %262 = vst [vmem:[%s813_s23 + $0xe8] sm:$0xff] %v261_v29  ;;  %v263_v30 = vld [vmem:[%s808_s22 + $0x1e0] sm:$0xff]  ;;  %v265_v31 = vld [vmem:[%s808_s22 + $0x1f0] sm:$0xff] }
  0x1f   : > { %264 = vst [vmem:[%s813_s23 + $0xf0] sm:$0xff] %v263_v30  ;;  %266 = vst [vmem:[%s813_s23 + $0xf8] sm:$0xff] %v265_v31 }
  0x20 PF: > { %p620_p5 = scmp.ge.s32.totalorder %s757_s11, 1  ;;  %p271_p6 = scmp.lt.s32.totalorder %s757_s11, 3 }
  0x22   : > { %p272_p7 = pnand %p620_p5, %p271_p6 }
  0x23   : > { %s278_s24 = sand.u32 (!%p272_p7), 1, %s749_s9   ;;  %s622_s29 = sshll.u32 (!%p272_p7), %s613_s12, 1 }
  0x24   : > { %275 = sbr.rel (%p272_p7) target bundleno = 305 (0x131), region = 62  ;;  %s621_s27 = sshll.u32 (!%p272_p7), %s278_s24, 8 }
  0x25   : > { %s886_s28 = scalar_lea.vmem (!%p272_p7), [#allocation2], %s621_s27  ;;  %p301_p8 = scmp.lt.s32.totalorder (!%p272_p7), %s622_s29, 3 }
  0x29   : > { %v882_v32 = vld [vmem:[%s937_s0] sm:$0xff]  ;;  %v685_v34 = vld [vmem:[%s886_s28 + $0x74] ss:$8 sps:$4 sm:$0xff]   ;;  %v687_v35 = vld [vmem:[%s886_s28 + $0x70] ss:$8 sps:$4 sm:$0xff]   ;;  %s944_s29 = smov (!%p301_p8, %s622_s29), 3 }
  0x2a   : > { %v625_v33 = vcombine.high %v882_v32, %v882_v32  ;;  %506 = vmatprep.subr.bf16.mxu0 %v685_v34  ;;  %v688_v36 = vld [vmem:[%s886_s28 + $0x64] ss:$8 sps:$4 sm:$0xff]   ;;  %v690_v37 = vld [vmem:[%s886_s28 + $0x60] ss:$8 sps:$4 sm:$0xff]   ;;  %v691_v38 = vld [vmem:[%s886_s28 + $0x54] ss:$8 sps:$4 sm:$0xff]   ;;  %v624_v2 = vcombine.low %v882_v32, %v882_v32 }
  0x2b   : > { %507 = vmatpush1.bf16.msra.mxu0 %v687_v35  ;;  %v693_v39 = vld [vmem:[%s886_s28 + $0x50] ss:$8 sps:$4 sm:$0xff]   ;;  %v694_v40 = vld [vmem:[%s886_s28 + $0x44] ss:$8 sps:$4 sm:$0xff]   ;;  %v696_v41 = vld [vmem:[%s886_s28 + $0x40] ss:$8 sps:$4 sm:$0xff]  }
  0x2c   : > { %538 = vmatprep.mubr.bf16.mxu0 %v625_v33  ;;  %508 = vmatprep.subr.bf16.mxu0 %v688_v36  ;;  %v697_v42 = vld [vmem:[%s886_s28 + $0x34] ss:$8 sps:$4 sm:$0xff]   ;;  %v699_v43 = vld [vmem:[%s886_s28 + $0x30] ss:$8 sps:$4 sm:$0xff]   ;;  %v700_v44 = vld [vmem:[%s886_s28 + $0x24] ss:$8 sps:$4 sm:$0xff]  }
  0x2d   : > { %v702_v45 = vld [vmem:[%s886_s28 + $0x20] ss:$8 sps:$4 sm:$0xff]   ;;  %v703_v46 = vld [vmem:[%s886_s28 + $0x14] ss:$8 sps:$4 sm:$0xff]   ;;  %v705_v47 = vld [vmem:[%s886_s28 + $0x10] ss:$8 sps:$4 sm:$0xff]  }
  0x2e   : > { %v706_v48 = vld [vmem:[%s886_s28 + $0x4] ss:$8 sps:$4 sm:$0xff]   ;;  %v708_v49 = vld [vmem:[%s886_s28] ss:$8 sps:$4 sm:$0xff]   ;;  %v709_v50 = vld [vmem:[%s886_s28 + $0xf4] ss:$8 sps:$4 sm:$0xff]  }
  0x2f   : > { %509 = vmatpush1.bf16.msra.mxu0 %v690_v37  ;;  %v711_v51 = vld [vmem:[%s886_s28 + $0xf0] ss:$8 sps:$4 sm:$0xff]   ;;  %v712_v52 = vld [vmem:[%s886_s28 + $0xe4] ss:$8 sps:$4 sm:$0xff]   ;;  %v714_v53 = vld [vmem:[%s886_s28 + $0xe0] ss:$8 sps:$4 sm:$0xff]  }
  0x30   : > { %510 = vmatprep.subr.bf16.mxu0 %v691_v38  ;;  %v715_v54 = vld [vmem:[%s886_s28 + $0xd4] ss:$8 sps:$4 sm:$0xff]   ;;  %v717_v55 = vld [vmem:[%s886_s28 + $0xd0] ss:$8 sps:$4 sm:$0xff]   ;;  %v718_v56 = vld [vmem:[%s886_s28 + $0xc4] ss:$8 sps:$4 sm:$0xff]  }
  0x31   : > { %v720_v57 = vld [vmem:[%s886_s28 + $0xc0] ss:$8 sps:$4 sm:$0xff]   ;;  %v721_v58 = vld [vmem:[%s886_s28 + $0xb4] ss:$8 sps:$4 sm:$0xff]   ;;  %v723_v59 = vld [vmem:[%s886_s28 + $0xb0] ss:$8 sps:$4 sm:$0xff]  }
  0x32   : > { %v724_v60 = vld [vmem:[%s886_s28 + $0xa4] ss:$8 sps:$4 sm:$0xff]   ;;  %v726_v61 = vld [vmem:[%s886_s28 + $0xa0] ss:$8 sps:$4 sm:$0xff]   ;;  %v727_v62 = vld [vmem:[%s886_s28 + $0x94] ss:$8 sps:$4 sm:$0xff]  }
  0x33   : > { %511 = vmatpush1.bf16.msra.mxu0 %v693_v39  ;;  %v729_v63 = vld [vmem:[%s886_s28 + $0x90] ss:$8 sps:$4 sm:$0xff]   ;;  %v730_v0 = vld [vmem:[%s886_s28 + $0x84] ss:$8 sps:$4 sm:$0xff]   ;;  %v732_v1 = vld [vmem:[%s886_s28 + $0x80] ss:$8 sps:$4 sm:$0xff]  }
  0x34   : > { %512 = vmatprep.subr.bf16.mxu0 %v694_v40  ;;  %s623_s30 = sshll.u32 %s944_s29, 3 }
  0x35   : > { %s304_s5 = scalar_lea.vmem %s939_s2, %s623_s30 }
  0x37   : > { %513 = vmatpush1.bf16.msra.mxu0 %v696_v41 }
  0x38   : > { %514 = vmatprep.subr.bf16.mxu0 %v697_v42 }
  0x3b   : > { %515 = vmatpush1.bf16.msra.mxu0 %v699_v43 }
  0x3c   : > { %516 = vmatprep.subr.bf16.mxu0 %v700_v44 }
  0x3f   : > { %517 = vmatpush1.bf16.msra.mxu0 %v702_v45 }
  0x40   : > { %518 = vmatprep.subr.bf16.mxu0 %v703_v46 }
  0x43   : > { %519 = vmatpush1.bf16.msra.mxu0 %v705_v47 }
  0x44   : > { %520 = vmatprep.subr.bf16.mxu0 %v706_v48 }
  0x47   : > { %521 = vmatpush1.bf16.msra.mxu0 %v708_v49 }
  0x48   : > { %522 = vmatprep.subr.bf16.mxu0 %v709_v50 }
  0x4b   : > { %523 = vmatpush2.bf16.msra.mxu0 %v711_v51 }
  0x4c   : > { %524 = vmatprep.subr.bf16.mxu0 %v712_v52 }
  0x4f   : > { %525 = vmatpush2.bf16.msra.mxu0 %v714_v53 }
  0x50   : > { %526 = vmatprep.subr.bf16.mxu0 %v715_v54 }
  0x53   : > { %527 = vmatpush2.bf16.msra.mxu0 %v717_v55 }
  0x54   : > { %528 = vmatprep.subr.bf16.mxu0 %v718_v56 }
  0x57   : > { %529 = vmatpush2.bf16.msra.mxu0 %v720_v57 }
  0x58   : > { %530 = vmatprep.subr.bf16.mxu0 %v721_v58 }
  0x5b   : > { %531 = vmatpush2.bf16.msra.mxu0 %v723_v59 }
  0x5c   : > { %532 = vmatprep.subr.bf16.mxu0 %v724_v60 }
  0x5f   : > { %533 = vmatpush2.bf16.msra.mxu0 %v726_v61 }
  0x60   : > { %534 = vmatprep.subr.bf16.mxu0 %v727_v62 }
  0x63   : > { %535 = vmatpush2.bf16.msra.mxu0 %v729_v63 }
  0x64   : > { %536 = vmatprep.subr.bf16.mxu0 %v730_v0 }
  0x67   : > { %537 = vmatpush2.bf16.msra.mxu0 %v732_v1 }
  0x6a   : > { %539 = vmatmul.mubr.bf16.vlgmr.msra.gmra.mxu0 %v624_v2 }
 0x12a   : > { %v540_v3 = vpop.f32.mrf.mxu0 }
 0x12b   : > { %v547_v4 = vmax.f32 %v540_v3, 0.0 }
 0x12c   : > { %v542_v5 = vpop.f32.mrf.mxu0 }
 0x12d   : > { %549 = vst [vmem:[%s304_s5] sm:$0xff] %v547_v4  ;;  %v548_v6 = vmax.f32 %v542_v5, 0.0 }
 0x12e   : > { %v544_v7 = vpop.f32.mrf.mxu0 }
 0x12f   : > { %550 = vst [vmem:[%s304_s5 + $0x8] sm:$0xff] %v548_v6 }
 0x130   : > { %v545_v8 = vpop.f32.mrf.mxu0 }
 0x131 PF: > { %p9_p9 = scmp.ge.s32.totalorder %s791_s13, 4   ;;  %s940_s9 = smov %s753_s10 }
 0x132   : > { %s941_s10 = smov %s800_s16  ;;  %s942_s11 = smov %s791_s13 }
 0x133   :  { %11 = sbr.rel (!%p9_p9) target bundleno = 2 (0x2), region = 101 }

// kernel: dilated_cnn_forward.4
= control target key start
LH: loop header
LB: loop body
LE: loop exit
PB: predicated region body
PF: predicated region fallthrough
CT: control target
= control target key end

     0   :  { %v256_v0 = vmov 0.0   ;;  %vm257_vm0 = vmmov 0   ;;  %v258_v3 = vmov 0   ;;  %vm99_vm1 = vcmask 523264   ;;  %s333_s1 = inlined_call_operand.vmem [shape: bf16[64,288], index: 1, kind: input, shape index: {}]   ;;  %s334_s0 = inlined_call_operand.vmem [shape: bf16[16,64], index: 0, kind: input, shape index: {}]   ;;  %s335_s2 = inlined_call_operand.vmem [shape: f32[16,288], index: 2, kind: output, shape index: {}]  }
   0x1   :  { %224 = vmatprep.subr.bf16.mxu1 %v256_v0  ;;  %v239_v1 = vld [vmem:[%s333_s1 + $0x4c] ss:$12 sps:$4 sm:$0xff]   ;;  %232 = vmatprep.mubr.msk.bf16.mxu1 %vm257_vm0, %v256_v0  ;;  %v241_v2 = vld [vmem:[%s333_s1 + $0x50] ss:$12 sps:$4 sm:$0xff]   ;;  %v242_v4 = vld [vmem:[%s333_s1 + $0x48] ss:$12 sps:$4 sm:$0xff]  }
   0x2   :  { %135 = vmatprep.mubr.bf16.mxu0 %v258_v3  ;;  %111 = vmatprep.subr.bf16.mxu0 %v239_v1  ;;  %v243_v5 = vld [vmem:[%s333_s1 + $0x34] ss:$12 sps:$4 sm:$0xff]   ;;  %v245_v6 = vld [vmem:[%s333_s1 + $0x38] ss:$12 sps:$4 sm:$0xff]   ;;  %v246_v7 = vld [vmem:[%s333_s1 + $0x30] ss:$12 sps:$4 sm:$0xff]  }
   0x3   :  { %225 = vmatpush3.bf16.msra.mxu1 %v241_v2  ;;  %112 = vmatpush1.bf16.msra.mxu0 %v242_v4  ;;  %v247_v8 = vld [vmem:[%s333_s1 + $0x1c] ss:$12 sps:$4 sm:$0xff]   ;;  %v249_v9 = vld [vmem:[%s333_s1 + $0x20] ss:$12 sps:$4 sm:$0xff]   ;;  %v250_v10 = vld [vmem:[%s333_s1 + $0x18] ss:$12 sps:$4 sm:$0xff]  }
   0x4   :  { %226 = vmatprep.subr.bf16.mxu1 %v256_v0  ;;  %113 = vmatprep.subr.bf16.mxu0 %v243_v5  ;;  %v251_v11 = vld [vmem:[%s333_s1 + $0x4] ss:$12 sps:$4 sm:$0xff]   ;;  %v253_v12 = vld [vmem:[%s333_s1 + $0x8] ss:$12 sps:$4 sm:$0xff]   ;;  %v254_v13 = vld [vmem:[%s333_s1] ss:$12 sps:$4 sm:$0xff]  }
   0x5   :  { %v255_v14 = vld [vmem:[%s334_s0] sm:$0xff]   ;;  %vm195_vm2 = vcmask 261120  }
   0x7   :  { %227 = vmatpush3.bf16.msra.mxu1 %v245_v6  ;;  %114 = vmatpush1.bf16.msra.mxu0 %v246_v7 }
   0x8   :  { %228 = vmatprep.subr.bf16.mxu1 %v256_v0  ;;  %115 = vmatprep.subr.bf16.mxu0 %v247_v8 }
   0xb   :  { %229 = vmatpush3.bf16.msra.mxu1 %v249_v9  ;;  %116 = vmatpush1.bf16.msra.mxu0 %v250_v10 }
   0xc   :  { %230 = vmatprep.subr.bf16.mxu1 %v256_v0  ;;  %117 = vmatprep.subr.bf16.mxu0 %v251_v11 }
   0xf   :  { %231 = vmatpush3.bf16.msra.mxu1 %v253_v12  ;;  %118 = vmatpush1.bf16.msra.mxu0 %v254_v13 }
  0x12   :  { %233 = vmatmul.mubr.msk.bf16.vlgmr.msra.gmra.mxu1 %vm99_vm1, %v255_v14  ;;  %217 = vmatmul.mubr.msk.bf16.vlgmr.msra.gmra.mxu0 %vm99_vm1, %v255_v14 }
  0xd2   :  { %v180_v15 = vpop.f32.mrf.mxu1  ;;  %v137_v17 = vpop.f32.mrf.mxu0 }
  0xd3   :  { %v189_v16 = vmax.f32 %v180_v15, 0.0  ;;  %v187_v18 = vmax.f32 %v137_v17, 0.0 }
  0xd4   :  { %v234_v19 = vpop.f32.mrf.mxu1  ;;  %v139_v20 = vpop.f32.mrf.mxu0 }
  0xd5   :  { %196 = vst.msk [vmem:[%s335_s2 + $0x10] sm:$0xff] %vm195_vm2, %v189_v16  ;;  %193 = vst [vmem:[%s335_s2] sm:$0xff] %v187_v18  ;;  %v188_v21 = vmax.f32 %v139_v20, 0.0 }
  0xd6   :  { %v183_v22 = vpop.f32.mrf.mxu1  ;;  %v141_v24 = vpop.f32.mrf.mxu0 }
  0xd7   :  { %v192_v23 = vmax.f32 %v183_v22, 0.0  ;;  %194 = vst [vmem:[%s335_s2 + $0x8] sm:$0xff] %v188_v21  ;;  %v190_v25 = vmax.f32 %v141_v24, 0.0 }
  0xd8   :  { %v235_v26 = vpop.f32.mrf.mxu1  ;;  %v143_v27 = vpop.f32.mrf.mxu0 }
  0xd9   :  { %199 = vst.msk [vmem:[%s335_s2 + $0x28] sm:$0xff] %vm195_vm2, %v192_v23  ;;  %197 = vst [vmem:[%s335_s2 + $0x18] sm:$0xff] %v190_v25  ;;  %v191_v28 = vmax.f32 %v143_v27, 0.0 }
  0xdb   :  { %198 = vst [vmem:[%s335_s2 + $0x20] sm:$0xff] %v191_v28 }

// kernel: dilated_cnn_forward.5
= control target key start
LH: loop header
LB: loop body
LE: loop exit
PB: predicated region body
PF: predicated region fallthrough
CT: control target
= control target key end

     0   :  { %v333_v27 = vlaneseq  ;;  %v2541_v35 = vmov 1966171168   ;;  %s3130_s0 = inlined_call_operand.vmem [shape: bf16[2,2304], index: 0, kind: input, shape index: {}]   ;;  %s3131_s1 = inlined_call_operand.vmem [shape: bf16[2304,128], index: 1, kind: input, shape index: {}]   ;;  %s3132_s2 = inlined_call_operand.vmem [shape: f32[1,128], index: 2, kind: input, shape index: {}]   ;;  %s3133_s3 = inlined_call_operand.vmem [shape: bf16[128,128], index: 3, kind: input, shape index: {}]   ;;  %s3134_s4 = inlined_call_operand.vmem [shape: f32[1,128], index: 4, kind: input, shape index: {}]   ;;  %s3135_s5 = inlined_call_operand.vmem [shape: bf16[128,10], index: 5, kind: input, shape index: {}]   ;;  %s3136_s6 = inlined_call_operand.vmem [shape: f32[1,10], index: 6, kind: input, shape index: {}]   ;;  %s3137_s7 = inlined_call_operand.hbm [shape: f32[2,10], index: 7, kind: output, shape index: {}]  }
   0x1   :  { %v2357_v0 = vld [vmem:[%s3131_s1 + $0x78] sm:$0xff]   ;;  %v2361_v4 = vld [vmem:[%s3131_s1 + $0x70] sm:$0xff]   ;;  %v2365_v8 = vld [vmem:[%s3131_s1 + $0x68] sm:$0xff]   ;;  %v331_v36 = vunpack.c.l.s4 %v2541_v35 }
   0x2   :  { %v2358_v1 = vld [vmem:[%s3131_s1 + $0x38] sm:$0xff]   ;;  %2097 = vmatprep.subr.bf16.mxu0 %v2357_v0  ;;  %v2362_v5 = vld [vmem:[%s3131_s1 + $0x30] sm:$0xff]   ;;  %v2366_v9 = vld [vmem:[%s3131_s1 + $0x28] sm:$0xff]   ;;  %v334_v32 = vshrl.u32 %v333_v27, 7 }
   0x3   :  { %v2359_v2 = vld [vmem:[%s3131_s1 + $0xf8] sm:$0xff]   ;;  %2098 = vmatpush3.bf16.msra.mxu0 %v2358_v1  ;;  %v2363_v6 = vld [vmem:[%s3131_s1 + $0xf0] sm:$0xff]   ;;  %v2367_v10 = vld [vmem:[%s3131_s1 + $0xe8] sm:$0xff]   ;;  %v332_v39 = vunpack.c.0.s8 %v331_v36 }
   0x4   :  { %v2360_v3 = vld [vmem:[%s3131_s1 + $0xb8] sm:$0xff]   ;;  %2119 = vmatprep.subr.bf16.mxu1 %v2359_v2  ;;  %2099 = vmatprep.subr.bf16.mxu0 %v2361_v4  ;;  %v2364_v7 = vld [vmem:[%s3131_s1 + $0xb0] sm:$0xff]   ;;  %v2368_v11 = vld [vmem:[%s3131_s1 + $0xa8] sm:$0xff]  }
   0x5   :  { %2120 = vmatpush3.bf16.msra.mxu1 %v2360_v3  ;;  %v2369_v12 = vld [vmem:[%s3131_s1 + $0x60] sm:$0xff]   ;;  %v2373_v16 = vld [vmem:[%s3131_s1 + $0x58] sm:$0xff]   ;;  %v2377_v20 = vld [vmem:[%s3131_s1 + $0x50] sm:$0xff]   ;;  %v2690_v41 = vsub.s32 %v332_v39, %v334_v32 }
   0x6   :  { %2121 = vmatprep.subr.bf16.mxu1 %v2363_v6  ;;  %v2370_v13 = vld [vmem:[%s3131_s1 + $0x20] sm:$0xff]   ;;  %v2374_v17 = vld [vmem:[%s3131_s1 + $0x18] sm:$0xff]   ;;  %v2378_v21 = vld [vmem:[%s3131_s1 + $0x10] sm:$0xff]  }
   0x7   :  { %2100 = vmatpush3.bf16.msra.mxu0 %v2362_v5  ;;  %v2371_v14 = vld [vmem:[%s3131_s1 + $0xe0] sm:$0xff]   ;;  %v2375_v18 = vld [vmem:[%s3131_s1 + $0xd8] sm:$0xff]   ;;  %v2379_v22 = vld [vmem:[%s3131_s1 + $0xd0] sm:$0xff]  }
   0x8   :  { %2101 = vmatprep.subr.bf16.mxu0 %v2365_v8  ;;  %v2372_v15 = vld [vmem:[%s3131_s1 + $0xa0] sm:$0xff]   ;;  %v2376_v19 = vld [vmem:[%s3131_s1 + $0x98] sm:$0xff]   ;;  %v2380_v23 = vld [vmem:[%s3131_s1 + $0x90] sm:$0xff]  }
   0x9   :  { %2122 = vmatpush3.bf16.msra.mxu1 %v2364_v7  ;;  %v2381_v24 = vld [vmem:[%s3131_s1 + $0x48] sm:$0xff]   ;;  %v2385_v29 = vld [vmem:[%s3131_s1 + $0x40] sm:$0xff]   ;;  %v2390_v37 = vld [vmem:[%s3131_s1 + $0x178] sm:$0xff]  }
   0xa   :  { %2123 = vmatprep.subr.bf16.mxu1 %v2367_v10  ;;  %v2382_v25 = vld [vmem:[%s3131_s1 + $0x8] sm:$0xff]   ;;  %v2386_v30 = vld [vmem:[%s3131_s1] sm:$0xff]   ;;  %v2392_v40 = vld [vmem:[%s3131_s1 + $0x1f8] sm:$0xff]  }
   0xb   :  { %2102 = vmatpush3.bf16.msra.mxu0 %v2366_v9  ;;  %v2383_v26 = vld [vmem:[%s3131_s1 + $0xc8] sm:$0xff]   ;;  %v2387_v31 = vld [vmem:[%s3131_s1 + $0xc0] sm:$0xff]   ;;  %v2391_v48 = vld [vmem:[%s3131_s1 + $0x138] sm:$0xff]  }
   0xc   :  { %2103 = vmatprep.subr.bf16.mxu0 %v2369_v12  ;;  %v2384_v28 = vld [vmem:[%s3131_s1 + $0x88] sm:$0xff]   ;;  %v28_v33 = vld [vmem:[%s3130_s0] sm:$0xff]  ;;  %v2394_v51 = vld [vmem:[%s3131_s1 + $0x170] sm:$0xff]  }
   0xd   :  { %2124 = vmatpush3.bf16.msra.mxu1 %v2368_v11  ;;  %v2389_v34 = vld [vmem:[%s3131_s1 + $0x80] sm:$0xff]   ;;  %v329_v38 = vcombine.high %v28_v33, %v28_v33  ;;  %v336_v42 = vrot.slane %v28_v33, %v2690_v41  ;;  %v2393_v53 = vld [vmem:[%s3131_s1 + $0x1b8] sm:$0xff]   ;;  %v2396_v54 = vld [vmem:[%s3131_s1 + $0x1f0] sm:$0xff]  }
   0xe   :  { %2125 = vmatprep.subr.bf16.mxu1 %v2371_v14  ;;  %v2395_v56 = vld [vmem:[%s3131_s1 + $0x130] sm:$0xff]   ;;  %v2398_v57 = vld [vmem:[%s3131_s1 + $0x168] sm:$0xff]   ;;  %v2402_v61 = vld [vmem:[%s3131_s1 + $0x160] sm:$0xff]  }
   0xf   :  { %2104 = vmatpush3.bf16.msra.mxu0 %v2370_v13  ;;  %v2694_v43 = vrot.slane %v329_v38, %v2690_v41  ;;  %v344_v44 = vcombine.high %v336_v42, %v336_v42  ;;  %v352_v45 = vrot.slane %v336_v42, %v2690_v41  ;;  %v2397_v58 = vld [vmem:[%s3131_s1 + $0x1b0] sm:$0xff]   ;;  %v2400_v59 = vld [vmem:[%s3131_s1 + $0x1e8] sm:$0xff]   ;;  %v2404_v63 = vld [vmem:[%s3131_s1 + $0x1e0] sm:$0xff]  }
  0x10   :  { %2105 = vmatprep.subr.bf16.mxu0 %v2373_v16  ;;  %v2399_v60 = vld [vmem:[%s3131_s1 + $0x128] sm:$0xff]   ;;  %v2403_v0 = vld [vmem:[%s3131_s1 + $0x120] sm:$0xff]   ;;  %v2406_v1 = vld [vmem:[%s3131_s1 + $0x158] sm:$0xff]  }
  0x11   :  { %2126 = vmatpush3.bf16.msra.mxu1 %v2372_v15  ;;  %v345_v46 = vcombine.high %v2694_v43, %v2694_v43  ;;  %v366_v47 = vrot.slane %v344_v44, %v2690_v41  ;;  %v374_v50 = vcombine.high %v352_v45, %v352_v45  ;;  %v2401_v62 = vld [vmem:[%s3131_s1 + $0x1a8] sm:$0xff]   ;;  %v2405_v2 = vld [vmem:[%s3131_s1 + $0x1a0] sm:$0xff]   ;;  %v2408_v3 = vld [vmem:[%s3131_s1 + $0x1d8] sm:$0xff]  }
  0x12   :  { %2127 = vmatprep.subr.bf16.mxu1 %v2375_v18  ;;  %v2407_v4 = vld [vmem:[%s3131_s1 + $0x118] sm:$0xff]   ;;  %v2410_v5 = vld [vmem:[%s3131_s1 + $0x150] sm:$0xff]   ;;  %v2414_v9 = vld [vmem:[%s3131_s1 + $0x148] sm:$0xff]  }
  0x13   :  { %2106 = vmatpush3.bf16.msra.mxu0 %v2374_v17  ;;  %v373_v49 = vrot.slane %v345_v46, %v2690_v41  ;;  %1363 = vmatprep.mubr.bf16.mxu0 %v366_v47  ;;  %v376_v52 = vcombine.high %v366_v47, %v366_v47  ;;  %v2409_v6 = vld [vmem:[%s3131_s1 + $0x198] sm:$0xff]   ;;  %v2412_v7 = vld [vmem:[%s3131_s1 + $0x1d0] sm:$0xff]   ;;  %v2416_v11 = vld [vmem:[%s3131_s1 + $0x1c8] sm:$0xff]   ;;  %v359_v17 = vrot.slane %v2694_v43, %v2690_v41 }
  0x14   :  { %2107 = vmatprep.subr.bf16.mxu0 %v2377_v20  ;;  %v2411_v8 = vld [vmem:[%s3131_s1 + $0x110] sm:$0xff]   ;;  %v2415_v12 = vld [vmem:[%s3131_s1 + $0x108] sm:$0xff]   ;;  %v2418_v13 = vld [vmem:[%s3131_s1 + $0x140] sm:$0xff]  }
  0x15   :  { %2128 = vmatpush3.bf16.msra.mxu1 %v2376_v19  ;;  %v377_v55 = vcombine.high %v373_v49, %v373_v49  ;;  %1403 = vmatprep.mubr.bf16.mxu1 %v376_v52  ;;  %v2413_v10 = vld [vmem:[%s3131_s1 + $0x190] sm:$0xff]   ;;  %v2417_v14 = vld [vmem:[%s3131_s1 + $0x188] sm:$0xff]   ;;  %v2420_v15 = vld [vmem:[%s3131_s1 + $0x1c0] sm:$0xff]  }
  0x16   :  { %2129 = vmatprep.subr.bf16.mxu1 %v2379_v22  ;;  %v2419_v16 = vld [vmem:[%s3131_s1 + $0x100] sm:$0xff]   ;;  %v2422_v18 = vld [vmem:[%s3131_s1 + $0x278] sm:$0xff]   ;;  %v375_v22 = vcombine.high %v359_v17, %v359_v17  ;;  %v2430_v27 = vld [vmem:[%s3131_s1 + $0x268] sm:$0xff]  }
  0x17   :  { %2108 = vmatpush3.bf16.msra.mxu0 %v2378_v21  ;;  %v2421_v19 = vld [vmem:[%s3131_s1 + $0x180] sm:$0xff]   ;;  %v2424_v20 = vld [vmem:[%s3131_s1 + $0x2f8] sm:$0xff]   ;;  %v2433_v32 = vld [vmem:[%s3131_s1 + $0x2a8] sm:$0xff]  }
  0x18   :  { %2109 = vmatprep.subr.bf16.mxu0 %v2381_v24  ;;  %v2423_v21 = vld [vmem:[%s3131_s1 + $0x238] sm:$0xff]   ;;  %v2436_v33 = vld [vmem:[%s3131_s1 + $0x2e0] sm:$0xff]   ;;  %v2442_v39 = vld [vmem:[%s3131_s1 + $0x250] sm:$0xff]  }
  0x19   :  { %2130 = vmatpush3.bf16.msra.mxu1 %v2380_v23  ;;  %v2426_v23 = vld [vmem:[%s3131_s1 + $0x270] sm:$0xff]   ;;  %v2425_v24 = vld [vmem:[%s3131_s1 + $0x2b8] sm:$0xff]   ;;  %v2437_v36 = vld [vmem:[%s3131_s1 + $0x2a0] sm:$0xff]  }
  0x1a   :  { %2131 = vmatprep.subr.bf16.mxu1 %v2383_v26  ;;  %v2427_v26 = vld [vmem:[%s3131_s1 + $0x230] sm:$0xff]   ;;  %v2438_v35 = vld [vmem:[%s3131_s1 + $0x258] sm:$0xff]   ;;  %v2446_v44 = vld [vmem:[%s3131_s1 + $0x248] sm:$0xff]  }
  0x1b   :  { %2110 = vmatpush3.bf16.msra.mxu0 %v2382_v25  ;;  %v2428_v25 = vld [vmem:[%s3131_s1 + $0x2f0] sm:$0xff]   ;;  %v2439_v38 = vld [vmem:[%s3131_s1 + $0x218] sm:$0xff]  }
  0x1c   :  { %2111 = vmatprep.subr.bf16.mxu0 %v2385_v29  ;;  %v2432_v29 = vld [vmem:[%s3131_s1 + $0x2e8] sm:$0xff]   ;;  %v2444_v42 = vld [vmem:[%s3131_s1 + $0x2d0] sm:$0xff]  }
  0x1d   :  { %2132 = vmatpush3.bf16.msra.mxu1 %v2384_v28  ;;  %v2429_v28 = vld [vmem:[%s3131_s1 + $0x2b0] sm:$0xff]  }
  0x1e   :  { %2133 = vmatprep.subr.bf16.mxu1 %v2387_v31  ;;  %v2434_v31 = vld [vmem:[%s3131_s1 + $0x260] sm:$0xff]   ;;  %v2443_v43 = vld [vmem:[%s3131_s1 + $0x210] sm:$0xff]  }
  0x1f   :  { %2112 = vmatpush3.bf16.msra.mxu0 %v2386_v30  ;;  %v2431_v30 = vld [vmem:[%s3131_s1 + $0x228] sm:$0xff]   ;;  %v2445_v46 = vld [vmem:[%s3131_s1 + $0x290] sm:$0xff]  }
  0x20   :  { %2141 = vmatprep.subr.bf16.mxu0 %v2390_v37  ;;  %v2440_v37 = vld [vmem:[%s3131_s1 + $0x2d8] sm:$0xff]  }
  0x21   :  { %2134 = vmatpush3.bf16.msra.mxu1 %v2389_v34  ;;  %v2435_v34 = vld [vmem:[%s3131_s1 + $0x220] sm:$0xff]  }
  0x22   :  { %2163 = vmatprep.subr.bf16.mxu1 %v2392_v40  ;;  %1364 = vmatmul.mubr.bf16.vlgmr.msra.gmra.mxu0 %v352_v45  ;;  %v2441_v40 = vld [vmem:[%s3131_s1 + $0x298] sm:$0xff]   ;;  %v29_v45 = vld [vmem:[%s3130_s0 + $0x8] sm:$0xff] }
  0x23   :  { %2142 = vmatpush3.bf16.msra.mxu0 %v2391_v48  ;;  %1443 = vmatprep.mubr.bf16.mxu0 %v373_v49  ;;  %v385_v47 = vrot.slane %v29_v45, %v2690_v41  ;;  %v378_v48 = vcombine.high %v29_v45, %v29_v45  ;;  %v2448_v49 = vld [vmem:[%s3131_s1 + $0x2c8] sm:$0xff]   ;;  %v2494_v45 = vld [vmem:[%s3131_s1 + $0x420] sm:$0xff]  }
  0x24   :  { %1404 = vmatmul.mubr.bf16.vlgmr.msra.gmra.mxu1 %v374_v50  ;;  %2143 = vmatprep.subr.bf16.mxu0 %v2394_v51  ;;  %v2447_v50 = vld [vmem:[%s3131_s1 + $0x208] sm:$0xff]  }
  0x25   :  { %2164 = vmatpush3.bf16.msra.mxu1 %v2393_v53  ;;  %1483 = vmatprep.mubr.bf16.mxu1 %v377_v55  ;;  %v393_v51 = vcombine.high %v385_v47, %v385_v47  ;;  %v2879_v52 = vrot.slane %v378_v48, %v2690_v41  ;;  %v2450_v53 = vld [vmem:[%s3131_s1 + $0x240] sm:$0xff]   ;;  %v2496_v48 = vld [vmem:[%s3131_s1 + $0x418] sm:$0xff]  }
  0x26   :  { %2165 = vmatprep.subr.bf16.mxu1 %v2396_v54  ;;  %v2449_v54 = vld [vmem:[%s3131_s1 + $0x288] sm:$0xff]  }
  0x27   :  { %2144 = vmatpush3.bf16.msra.mxu0 %v2395_v56  ;;  %v415_v55 = vrot.slane %v393_v51, %v2690_v41  ;;  %v394_v56 = vcombine.high %v2879_v52, %v2879_v52 }
  0x28   :  { %2145 = vmatprep.subr.bf16.mxu0 %v2398_v57  ;;  %v2452_v57 = vld [vmem:[%s3131_s1 + $0x2c0] sm:$0xff]  }
  0x29   :  { %2166 = vmatpush3.bf16.msra.mxu1 %v2397_v58  ;;  %v2451_v58 = vld [vmem:[%s3131_s1 + $0x200] sm:$0xff]  }
  0x2a   :  { %2167 = vmatprep.subr.bf16.mxu1 %v2400_v59  ;;  %v425_v59 = vcombine.high %v415_v55, %v415_v55 }
  0x2b   :  { %2146 = vmatpush3.bf16.msra.mxu0 %v2399_v60  ;;  %v401_v60 = vrot.slane %v385_v47, %v2690_v41  ;;  %v2495_v47 = vld [vmem:[%s3131_s1 + $0x458] sm:$0xff]  }
  0x2c   :  { %2147 = vmatprep.subr.bf16.mxu0 %v2402_v61  ;;  %v2454_v61 = vld [vmem:[%s3131_s1 + $0x378] sm:$0xff]  }
  0x2d   :  { %2168 = vmatpush3.bf16.msra.mxu1 %v2401_v62  ;;  %v2453_v62 = vld [vmem:[%s3131_s1 + $0x280] sm:$0xff]  }
  0x2e   :  { %2169 = vmatprep.subr.bf16.mxu1 %v2404_v63  ;;  %v422_v63 = vrot.slane %v394_v56, %v2690_v41 }
  0x2f   :  { %2148 = vmatpush3.bf16.msra.mxu0 %v2403_v0  ;;  %v2456_v0 = vld [vmem:[%s3131_s1 + $0x3f8] sm:$0xff]  }
  0x30   :  { %2149 = vmatprep.subr.bf16.mxu0 %v2406_v1  ;;  %v2455_v1 = vld [vmem:[%s3131_s1 + $0x338] sm:$0xff]  }
  0x31   :  { %2170 = vmatpush3.bf16.msra.mxu1 %v2405_v2  ;;  %v423_v2 = vcombine.high %v401_v60, %v401_v60 }
  0x32   :  { %2171 = vmatprep.subr.bf16.mxu1 %v2408_v3  ;;  %v2458_v3 = vld [vmem:[%s3131_s1 + $0x370] sm:$0xff]  }
  0x33   :  { %2150 = vmatpush3.bf16.msra.mxu0 %v2407_v4  ;;  %v2457_v4 = vld [vmem:[%s3131_s1 + $0x3b8] sm:$0xff]  }
  0x34   :  { %2151 = vmatprep.subr.bf16.mxu0 %v2410_v5  ;;  %v426_v5 = vcombine.high %v422_v63, %v422_v63 }
  0x35   :  { %2172 = vmatpush3.bf16.msra.mxu1 %v2409_v6  ;;  %v2460_v6 = vld [vmem:[%s3131_s1 + $0x3f0] sm:$0xff]  }
  0x36   :  { %2173 = vmatprep.subr.bf16.mxu1 %v2412_v7  ;;  %v2459_v7 = vld [vmem:[%s3131_s1 + $0x330] sm:$0xff]  }
  0x37   :  { %2152 = vmatpush3.bf16.msra.mxu0 %v2411_v8  ;;  %v2462_v8 = vld [vmem:[%s3131_s1 + $0x368] sm:$0xff]  }
  0x38   :  { %2153 = vmatprep.subr.bf16.mxu0 %v2414_v9  ;;  %v2461_v9 = vld [vmem:[%s3131_s1 + $0x3b0] sm:$0xff]  }
  0x39   :  { %2174 = vmatpush3.bf16.msra.mxu1 %v2413_v10  ;;  %v2464_v10 = vld [vmem:[%s3131_s1 + $0x3e8] sm:$0xff]  }
  0x3a   :  { %2175 = vmatprep.subr.bf16.mxu1 %v2416_v11  ;;  %v2463_v11 = vld [vmem:[%s3131_s1 + $0x328] sm:$0xff]  }
  0x3b   :  { %2154 = vmatpush3.bf16.msra.mxu0 %v2415_v12  ;;  %v2466_v12 = vld [vmem:[%s3131_s1 + $0x360] sm:$0xff]  }
  0x3c   :  { %2155 = vmatprep.subr.bf16.mxu0 %v2418_v13  ;;  %v2465_v13 = vld [vmem:[%s3131_s1 + $0x3a8] sm:$0xff]  }
  0x3d   :  { %2176 = vmatpush3.bf16.msra.mxu1 %v2417_v14  ;;  %v2468_v14 = vld [vmem:[%s3131_s1 + $0x3e0] sm:$0xff]  }
  0x3e   :  { %2177 = vmatprep.subr.bf16.mxu1 %v2420_v15  ;;  %v2467_v15 = vld [vmem:[%s3131_s1 + $0x320] sm:$0xff]  }
  0x3f   :  { %2156 = vmatpush3.bf16.msra.mxu0 %v2419_v16  ;;  %v2470_v16 = vld [vmem:[%s3131_s1 + $0x358] sm:$0xff]  }
  0x40   :  { %2185 = vmatprep.subr.bf16.mxu0 %v2422_v18  ;;  %v2472_v18 = vld [vmem:[%s3131_s1 + $0x3d8] sm:$0xff]  }
  0x41   :  { %2178 = vmatpush3.bf16.msra.mxu1 %v2421_v19  ;;  %v2471_v19 = vld [vmem:[%s3131_s1 + $0x318] sm:$0xff]  }
  0x42   :  { %1444 = vmatmul.mubr.bf16.vlgmr.msra.gmra.mxu0 %v359_v17  ;;  %2207 = vmatprep.subr.bf16.mxu1 %v2424_v20  ;;  %v2469_v17 = vld [vmem:[%s3131_s1 + $0x3a0] sm:$0xff]   ;;  %v2474_v20 = vld [vmem:[%s3131_s1 + $0x350] sm:$0xff]  }
  0x43   :  { %2186 = vmatpush3.bf16.msra.mxu0 %v2423_v21  ;;  %1523 = vmatprep.mubr.bf16.mxu0 %v415_v55  ;;  %v2473_v21 = vld [vmem:[%s3131_s1 + $0x398] sm:$0xff]  }
  0x44   :  { %1484 = vmatmul.mubr.bf16.vlgmr.msra.gmra.mxu1 %v375_v22  ;;  %2187 = vmatprep.subr.bf16.mxu0 %v2426_v23  ;;  %v2476_v22 = vld [vmem:[%s3131_s1 + $0x3d0] sm:$0xff]  }
  0x45   :  { %2208 = vmatpush3.bf16.msra.mxu1 %v2425_v24  ;;  %1563 = vmatprep.mubr.bf16.mxu1 %v425_v59  ;;  %v2475_v23 = vld [vmem:[%s3131_s1 + $0x310] sm:$0xff]   ;;  %v2478_v24 = vld [vmem:[%s3131_s1 + $0x348] sm:$0xff]  }
  0x46   :  { %2209 = vmatprep.subr.bf16.mxu1 %v2428_v25  ;;  %v2477_v25 = vld [vmem:[%s3131_s1 + $0x390] sm:$0xff]  }
  0x47   :  { %2188 = vmatpush3.bf16.msra.mxu0 %v2427_v26  ;;  %v2480_v26 = vld [vmem:[%s3131_s1 + $0x3c8] sm:$0xff]  }
  0x48   :  { %2189 = vmatprep.subr.bf16.mxu0 %v2430_v27  ;;  %v2479_v27 = vld [vmem:[%s3131_s1 + $0x308] sm:$0xff]  }
  0x49   :  { %2210 = vmatpush3.bf16.msra.mxu1 %v2429_v28  ;;  %v2482_v28 = vld [vmem:[%s3131_s1 + $0x340] sm:$0xff]  }
  0x4a   :  { %2211 = vmatprep.subr.bf16.mxu1 %v2432_v29  ;;  %v2481_v29 = vld [vmem:[%s3131_s1 + $0x388] sm:$0xff]  }
  0x4b   :  { %2190 = vmatpush3.bf16.msra.mxu0 %v2431_v30  ;;  %v2484_v30 = vld [vmem:[%s3131_s1 + $0x3c0] sm:$0xff]  }
  0x4c   :  { %2191 = vmatprep.subr.bf16.mxu0 %v2434_v31  ;;  %v2483_v31 = vld [vmem:[%s3131_s1 + $0x300] sm:$0xff]  }
  0x4d   :  { %2212 = vmatpush3.bf16.msra.mxu1 %v2433_v32  ;;  %v408_v32 = vrot.slane %v2879_v52, %v2690_v41 }
  0x4e   :  { %2213 = vmatprep.subr.bf16.mxu1 %v2436_v33  ;;  %v2487_v33 = vld [vmem:[%s3131_s1 + $0x478] sm:$0xff]  }
  0x4f   :  { %2192 = vmatpush3.bf16.msra.mxu0 %v2435_v34  ;;  %v2486_v34 = vld [vmem:[%s3131_s1 + $0x380] sm:$0xff]  }
  0x50   :  { %2193 = vmatprep.subr.bf16.mxu0 %v2438_v35  ;;  %v2488_v35 = vld [vmem:[%s3131_s1 + $0x438] sm:$0xff]  }
  0x51   :  { %2214 = vmatpush3.bf16.msra.mxu1 %v2437_v36  ;;  %v424_v36 = vcombine.high %v408_v32, %v408_v32 }
  0x52   :  { %2215 = vmatprep.subr.bf16.mxu1 %v2440_v37  ;;  %v2489_v37 = vld [vmem:[%s3131_s1 + $0x470] sm:$0xff]  }
  0x53   :  { %2194 = vmatpush3.bf16.msra.mxu0 %v2439_v38  ;;  %v2490_v38 = vld [vmem:[%s3131_s1 + $0x430] sm:$0xff]  }
  0x54   :  { %2195 = vmatprep.subr.bf16.mxu0 %v2442_v39  ;;  %v2491_v39 = vld [vmem:[%s3131_s1 + $0x468] sm:$0xff]  }
  0x55   :  { %2216 = vmatpush3.bf16.msra.mxu1 %v2441_v40  ;;  %v2492_v40 = vld [vmem:[%s3131_s1 + $0x428] sm:$0xff]  }
  0x56   :  { %2217 = vmatprep.subr.bf16.mxu1 %v2444_v42  ;;  %v2493_v42 = vld [vmem:[%s3131_s1 + $0x460] sm:$0xff]  }
  0x57   :  { %2196 = vmatpush3.bf16.msra.mxu0 %v2443_v43  ;;  %v1934_v43 = vld.sshfl [vmem:[%s3130_s0 + $0x10] sm:$0x11 pattern:$0x75316420] }
  0x58   :  { %2197 = vmatprep.subr.bf16.mxu0 %v2446_v44  ;;  %v434_v44 = vcombine.high %v1934_v43, %v1934_v43 }
  0x59   :  { %2218 = vmatpush3.bf16.msra.mxu1 %v2445_v46 }
  0x5a   :  { %2219 = vmatprep.subr.bf16.mxu1 %v2448_v49  ;;  %v448_v46 = vrot.slane %v434_v44, %v2690_v41  ;;  %v2497_v49 = vld [vmem:[%s3131_s1 + $0x450] sm:$0xff]  }
  0x5b   :  { %2198 = vmatpush3.bf16.msra.mxu0 %v2447_v50 }
  0x5c   :  { %2199 = vmatprep.subr.bf16.mxu0 %v2450_v53 }
  0x5d   :  { %2220 = vmatpush3.bf16.msra.mxu1 %v2449_v54 }
  0x5e   :  { %2221 = vmatprep.subr.bf16.mxu1 %v2452_v57 }
  0x5f   :  { %2200 = vmatpush3.bf16.msra.mxu0 %v2451_v58 }
  0x60   :  { %2229 = vmatprep.subr.bf16.mxu0 %v2454_v61 }
  0x61   :  { %2222 = vmatpush3.bf16.msra.mxu1 %v2453_v62 }
  0x62   :  { %1524 = vmatmul.mubr.bf16.vlgmr.msra.gmra.mxu0 %v401_v60  ;;  %2251 = vmatprep.subr.bf16.mxu1 %v2456_v0 }
  0x63   :  { %2230 = vmatpush3.bf16.msra.mxu0 %v2455_v1  ;;  %1603 = vmatprep.mubr.bf16.mxu0 %v422_v63 }
  0x64   :  { %1564 = vmatmul.mubr.bf16.vlgmr.msra.gmra.mxu1 %v423_v2  ;;  %2231 = vmatprep.subr.bf16.mxu0 %v2458_v3 }
  0x65   :  { %2252 = vmatpush3.bf16.msra.mxu1 %v2457_v4  ;;  %1643 = vmatprep.mubr.bf16.mxu1 %v426_v5 }
  0x66   :  { %2253 = vmatprep.subr.bf16.mxu1 %v2460_v6 }
  0x67   :  { %2232 = vmatpush3.bf16.msra.mxu0 %v2459_v7 }
  0x68   :  { %2233 = vmatprep.subr.bf16.mxu0 %v2462_v8 }
  0x69   :  { %2254 = vmatpush3.bf16.msra.mxu1 %v2461_v9 }
  0x6a   :  { %2255 = vmatprep.subr.bf16.mxu1 %v2464_v10 }
  0x6b   :  { %2234 = vmatpush3.bf16.msra.mxu0 %v2463_v11 }
  0x6c   :  { %2235 = vmatprep.subr.bf16.mxu0 %v2466_v12 }
  0x6d   :  { %2256 = vmatpush3.bf16.msra.mxu1 %v2465_v13 }
  0x6e   :  { %2257 = vmatprep.subr.bf16.mxu1 %v2468_v14 }
  0x6f   :  { %2236 = vmatpush3.bf16.msra.mxu0 %v2467_v15 }
  0x70   :  { %2237 = vmatprep.subr.bf16.mxu0 %v2470_v16 }
  0x71   :  { %2258 = vmatpush3.bf16.msra.mxu1 %v2469_v17 }
  0x72   :  { %2259 = vmatprep.subr.bf16.mxu1 %v2472_v18 }
  0x73   :  { %2238 = vmatpush3.bf16.msra.mxu0 %v2471_v19 }
  0x74   :  { %2239 = vmatprep.subr.bf16.mxu0 %v2474_v20 }
  0x75   :  { %2260 = vmatpush3.bf16.msra.mxu1 %v2473_v21 }
  0x76   :  { %2261 = vmatprep.subr.bf16.mxu1 %v2476_v22 }
  0x77   :  { %2240 = vmatpush3.bf16.msra.mxu0 %v2475_v23 }
  0x78   :  { %2241 = vmatprep.subr.bf16.mxu0 %v2478_v24 }
  0x79   :  { %2262 = vmatpush3.bf16.msra.mxu1 %v2477_v25 }
  0x7a   :  { %2263 = vmatprep.subr.bf16.mxu1 %v2480_v26 }
  0x7b   :  { %2242 = vmatpush3.bf16.msra.mxu0 %v2479_v27 }
  0x7c   :  { %2243 = vmatprep.subr.bf16.mxu0 %v2482_v28 }
  0x7d   :  { %2264 = vmatpush3.bf16.msra.mxu1 %v2481_v29 }
  0x7e   :  { %2265 = vmatprep.subr.bf16.mxu1 %v2484_v30 }
  0x7f   :  { %2244 = vmatpush3.bf16.msra.mxu0 %v2483_v31 }
  0x80   :  { %2273 = vmatprep.subr.bf16.mxu0 %v2487_v33 }
  0x81   :  { %2266 = vmatpush3.bf16.msra.mxu1 %v2486_v34 }
  0x82   :  { %1604 = vmatmul.mubr.bf16.vlgmr.msra.gmra.mxu0 %v408_v32 }
  0x83   :  { %2274 = vmatpush3.bf16.msra.mxu0 %v2488_v35  ;;  %1683 = vmatprep.mubr.bf16.mxu0 %v448_v46 }
  0x84   :  { %1644 = vmatmul.mubr.bf16.vlgmr.msra.gmra.mxu1 %v424_v36  ;;  %2275 = vmatprep.subr.bf16.mxu0 %v2489_v37 }
  0x87   :  { %2276 = vmatpush3.bf16.msra.mxu0 %v2490_v38 }
  0x88   :  { %2277 = vmatprep.subr.bf16.mxu0 %v2491_v39 }
  0x8b   :  { %2278 = vmatpush3.bf16.msra.mxu0 %v2492_v40 }
  0x8c   :  { %2279 = vmatprep.subr.bf16.mxu0 %v2493_v42 }
  0x8f   :  { %2280 = vmatpush3.bf16.msra.mxu0 %v2494_v45 }
  0x90   :  { %2281 = vmatprep.subr.bf16.mxu0 %v2495_v47 }
  0x91   :  { %12 = vsyncpa [#allocation3], 0  ;;  %v2498_v50 = vld [vmem:[%s3131_s1 + $0x410] sm:$0xff]   ;;  %v2499_v51 = vld [vmem:[%s3131_s1 + $0x448] sm:$0xff]   ;;  %v441_v55 = vrot.slane %v1934_v43, %v2690_v41  ;;  %v2542_v57 = vmov 0.0   ;;  %vm2543_vm0 = vmmov 0  }
  0x92   :  { %v2500_v52 = vld [vmem:[%s3131_s1 + $0x408] sm:$0xff]   ;;  %v2501_v53 = vld [vmem:[%s3131_s1 + $0x440] sm:$0xff]   ;;  %v2503_v56 = vld [vmem:[%s3133_s3 + $0x38] sm:$0xff]   ;;  %2313 = vmatprep.subr.bf16.mxu1 %v2542_v57  ;;  %2329 = vmatprep.mubr.msk.bf16.mxu1 %vm2543_vm0, %v2542_v57  ;;  %s2544_s28 = smov [#allocation2]   ;;  %vm1917_vm1 = vcmask 74752  }
  0x93   :  { %2282 = vmatpush3.bf16.msra.mxu0 %v2496_v48  ;;  %v2502_v54 = vld [vmem:[%s3131_s1 + $0x400] sm:$0xff]   ;;  %2314 = vmatpush3.bf16.msra.mxu1 %v2503_v56  ;;  %v2504_v58 = vld [vmem:[%s3133_s3 + $0x30] sm:$0xff]   ;;  %v2505_v41 = vld [vmem:[%s3133_s3 + $0x28] sm:$0xff]   ;;  %s1925_s29 = sshll.u32 %s2544_s28, 4  ;;  %s1926_s29 = int_to_ptr.vmem [resolvable:$true] %s1925_s29 }
  0x94   :  { %2283 = vmatprep.subr.bf16.mxu0 %v2497_v49  ;;  %2315 = vmatprep.subr.bf16.mxu1 %v2542_v57  ;;  %v2506_v59 = vld [vmem:[%s3133_s3 + $0x20] sm:$0xff]   ;;  %v2507_v60 = vld [vmem:[%s3133_s3 + $0x18] sm:$0xff]   ;;  %v2508_v61 = vld [vmem:[%s3133_s3 + $0x10] sm:$0xff]   ;;  %p2524_p1 = scmp.lt.s32.totalorder %s1926_s29, %s1926_s29 }
  0x95   :  { %v1933_v63 = vld [vmem:[%s3132_s2] ss:$0 sm:$0xff]  ;;  %v2509_v2 = vld [vmem:[%s3133_s3 + $0x8] sm:$0xff]   ;;  %v2511_v13 = vld [vmem:[%s3135_s5 + $0x38] sm:$0xff]  }
  0x96   :  { %v2510_v10 = vld [vmem:[%s3133_s3] sm:$0xff]   ;;  %v2512_v14 = vld [vmem:[%s3135_s5 + $0x30] sm:$0xff]   ;;  %v2513_v15 = vld [vmem:[%s3135_s5 + $0x28] sm:$0xff]  }
  0x97   :  { %2284 = vmatpush3.bf16.msra.mxu0 %v2498_v50  ;;  %2316 = vmatpush3.bf16.msra.mxu1 %v2504_v58  ;;  %v2514_v16 = vld [vmem:[%s3135_s5 + $0x20] sm:$0xff]   ;;  %v2515_v17 = vld [vmem:[%s3135_s5 + $0x18] sm:$0xff]   ;;  %v2516_v18 = vld [vmem:[%s3135_s5 + $0x10] sm:$0xff]  }
  0x98   :  { %2285 = vmatprep.subr.bf16.mxu0 %v2499_v51  ;;  %2317 = vmatprep.subr.bf16.mxu1 %v2542_v57 }
  0x9b   :  { %2286 = vmatpush3.bf16.msra.mxu0 %v2500_v52  ;;  %2318 = vmatpush3.bf16.msra.mxu1 %v2505_v41 }
  0x9c   :  { %2287 = vmatprep.subr.bf16.mxu0 %v2501_v53  ;;  %2319 = vmatprep.subr.bf16.mxu1 %v2542_v57 }
  0x9f   :  { %2288 = vmatpush3.bf16.msra.mxu0 %v2502_v54  ;;  %2320 = vmatpush3.bf16.msra.mxu1 %v2506_v59 }
  0xa0   :  { %2333 = vmatprep.subr.bf16.mxu0 %v2542_v57  ;;  %2321 = vmatprep.subr.bf16.mxu1 %v2542_v57 }
  0xa2   :  { %1684 = vmatmul.mubr.bf16.vlgmr.msra.gmra.mxu0 %v441_v55 }
  0xa3   :  { %2322 = vmatpush3.bf16.msra.mxu1 %v2507_v60  ;;  %2349 = vmatprep.mubr.msk.bf16.mxu0 %vm2543_vm0, %v2542_v57 }
  0xa4   :  { %2323 = vmatprep.subr.bf16.mxu1 %v2542_v57  ;;  %2334 = vmatpush3.bf16.msra.mxu0 %v2511_v13 }
  0xa5   :  { %2335 = vmatprep.subr.bf16.mxu0 %v2542_v57 }
  0xa7   :  { %2324 = vmatpush3.bf16.msra.mxu1 %v2508_v61 }
  0xa8   :  { %2325 = vmatprep.subr.bf16.mxu1 %v2542_v57  ;;  %2336 = vmatpush3.bf16.msra.mxu0 %v2512_v14 }
  0xa9   :  { %2337 = vmatprep.subr.bf16.mxu0 %v2542_v57 }
  0xab   :  { %2326 = vmatpush3.bf16.msra.mxu1 %v2509_v2  ;;  %v2079_v2 = vld [vmem:[%s3134_s4] ss:$0 sm:$0xff]  ;;  %s2519_s4 = scalar_lea.vmem %s1926_s29, 32 }
  0xac   :  { %2327 = vmatprep.subr.bf16.mxu1 %v2542_v57  ;;  %2338 = vmatpush3.bf16.msra.mxu0 %v2513_v15  ;;  %p2520_p0 = scmp.ne.s32.totalorder %s1926_s29, %s2519_s4  ;;  %p2525_p2 = scmp.lt.s32.totalorder %s2519_s4, %s2519_s4 }
  0xad   :  { %2339 = vmatprep.subr.bf16.mxu0 %v2542_v57 }
  0xae   :  { %p2526_p3 = por %p2525_p2, %p2524_p1 }
  0xaf   :  { %2328 = vmatpush3.bf16.msra.mxu1 %v2510_v10 }
  0xb0   :  { %2340 = vmatpush3.bf16.msra.mxu0 %v2514_v16  ;;  %p2527_p4 = pnand %p2526_p3, %p2520_p0 }
  0xb1   :  { %2341 = vmatprep.subr.bf16.mxu0 %v2542_v57 }
  0xb4   :  { %2342 = vmatpush3.bf16.msra.mxu0 %v2515_v17 }
  0xb5   :  { %2343 = vmatprep.subr.bf16.mxu0 %v2542_v57 }
  0xb8   :  { %2344 = vmatpush3.bf16.msra.mxu0 %v2516_v18 }
  0xb9   :  { %2345 = vmatprep.subr.bf16.mxu0 %v2542_v57 }
  0xe2   :  { %v2113_v62 = vpop.f32.mrf.mxu0 }
  0xe4   :  { %v2114_v0 = vpop.f32.mrf.mxu0  ;;  %v2135_v1 = vpop.f32.mrf.mxu1 }
  0xe5   :  { %v2115_v3 = vadd.f32 %v2114_v0, %v2113_v62  ;;  %v2517_v0 = vld [vmem:[%s3135_s5 + $0x8] sm:$0xff]  }
  0xe6   :  { %v2116_v4 = vpop.f32.mrf.mxu0  ;;  %v2136_v5 = vpop.f32.mrf.mxu1  ;;  %2346 = vmatpush3.bf16.msra.mxu0 %v2517_v0 }
  0xe7   :  { %v1366_v6 = vadd.f32 %v2115_v3, %v1933_v63  ;;  %v2137_v7 = vadd.f32 %v2136_v5, %v2135_v1  ;;  %2347 = vmatprep.subr.bf16.mxu0 %v2542_v57  ;;  %v2518_v1 = vld [vmem:[%s3135_s5] sm:$0xff]  }
  0xe8   :  { %v2117_v8 = vpop.f32.mrf.mxu0  ;;  %v2138_v9 = vpop.f32.mrf.mxu1  ;;  %v2088_v57 = vld [vmem:[%s3136_s6] ss:$0 sm:$0xff] }
  0xe9   :  { %v1406_v11 = vadd.f32 %v2137_v7, %v1366_v6 }
  0xea   :  { %v2139_v12 = vpop.f32.mrf.mxu1  ;;  %2348 = vmatpush3.bf16.msra.mxu0 %v2518_v1 }
 0x102   :  { %v2157_v19 = vpop.f32.mrf.mxu0 }
 0x104   :  { %v2158_v20 = vpop.f32.mrf.mxu0  ;;  %v2179_v21 = vpop.f32.mrf.mxu1 }
 0x105   :  { %v2159_v22 = vadd.f32 %v2158_v20, %v2157_v19 }
 0x106   :  { %v2160_v23 = vpop.f32.mrf.mxu0  ;;  %v2180_v24 = vpop.f32.mrf.mxu1 }
 0x107   :  { %v1446_v25 = vadd.f32 %v2159_v22, %v1406_v11  ;;  %v2181_v26 = vadd.f32 %v2180_v24, %v2179_v21 }
 0x108   :  { %v2161_v27 = vpop.f32.mrf.mxu0  ;;  %v2182_v28 = vpop.f32.mrf.mxu1 }
 0x109   :  { %v1486_v29 = vadd.f32 %v2181_v26, %v1446_v25 }
 0x10a   :  { %v2183_v30 = vpop.f32.mrf.mxu1 }
 0x122   :  { %v2201_v31 = vpop.f32.mrf.mxu0 }
 0x124   :  { %v2202_v32 = vpop.f32.mrf.mxu0  ;;  %v2223_v33 = vpop.f32.mrf.mxu1 }
 0x125   :  { %v2203_v48 = vadd.f32 %v2202_v32, %v2201_v31 }
 0x126   :  { %v2204_v34 = vpop.f32.mrf.mxu0  ;;  %v2224_v35 = vpop.f32.mrf.mxu1 }
 0x127   :  { %v1526_v49 = vadd.f32 %v2203_v48, %v1486_v29  ;;  %v2225_v50 = vadd.f32 %v2224_v35, %v2223_v33 }
 0x128   :  { %v2205_v36 = vpop.f32.mrf.mxu0  ;;  %v2226_v37 = vpop.f32.mrf.mxu1 }
 0x129   :  { %v1566_v52 = vadd.f32 %v2225_v50, %v1526_v49 }
 0x12a   :  { %v2227_v38 = vpop.f32.mrf.mxu1 }
 0x142   :  { %v2245_v39 = vpop.f32.mrf.mxu0 }
 0x144   :  { %v2246_v40 = vpop.f32.mrf.mxu0  ;;  %v2267_v42 = vpop.f32.mrf.mxu1 }
 0x145   :  { %v2247_v51 = vadd.f32 %v2246_v40, %v2245_v39 }
 0x146   :  { %v2248_v43 = vpop.f32.mrf.mxu0  ;;  %v2268_v44 = vpop.f32.mrf.mxu1 }
 0x147   :  { %v1606_v53 = vadd.f32 %v2247_v51, %v1566_v52  ;;  %v2269_v54 = vadd.f32 %v2268_v44, %v2267_v42 }
 0x148   :  { %v2249_v45 = vpop.f32.mrf.mxu0  ;;  %v2270_v46 = vpop.f32.mrf.mxu1 }
 0x149   :  { %v1646_v58 = vadd.f32 %v2269_v54, %v1606_v53 }
 0x14a   :  { %v2271_v47 = vpop.f32.mrf.mxu1 }
 0x162   :  { %v2289_v55 = vpop.f32.mrf.mxu0 }
 0x164   :  { %v2290_v56 = vpop.f32.mrf.mxu0 }
 0x165   :  { %v2291_v41 = vadd.f32 %v2290_v56, %v2289_v55 }
 0x166   :  { %v2292_v59 = vpop.f32.mrf.mxu0 }
 0x167   :  { %v1686_v60 = vadd.f32 %v2291_v41, %v1646_v58 }
 0x168   :  { %v2293_v61 = vpop.f32.mrf.mxu0 }
 0x169   :  { %v1691_v62 = vmax.f32 %v1686_v60, 0.0 }
 0x16b   :  { %v1692_v63 = vpack.c.bf16 %v1691_v62, %v1691_v62 }
 0x16d   :  { %2330 = vmatmul.mubr.bf16.vlgmr.msra.gmra.mxu1 %v1692_v63 }
 0x22d   :  { %v1798_v3 = vpop.f32.mrf.mxu1 }
 0x22e   :  { %v1799_v4 = vadd.f32 %v2079_v2, %v1798_v3 }
 0x22f   :  { %v2331_v5 = vpop.f32.mrf.mxu1 }
 0x230   :  { %v1804_v6 = vmax.f32 %v1799_v4, 0.0 }
 0x231   :  { %v1801_v7 = vpop.f32.mrf.mxu1 }
 0x232   :  { %v1805_v8 = vpack.c.bf16 %v1804_v6, %v1804_v6 }
 0x233   :  { %v2332_v9 = vpop.f32.mrf.mxu1 }
 0x234   :  { %2350 = vmatmul.mubr.bf16.vlgmr.msra.gmra.mxu0 %v1805_v8 }
 0x2f4   :  { %v1911_v10 = vpop.f32.mrf.mxu0 }
 0x2f5   :  { %v1912_v11 = vadd.f32 %v2088_v57, %v1911_v10 }
 0x2f6   :  { %v2351_v12 = vpop.f32.mrf.mxu0 }
 0x2f7   :  { %1918 = vst.msk [vmem:[#allocation2] sm:$0x3] %vm1917_vm1, %v1912_v11 }
 0x2f8   :  { %v1914_v13 = vpop.f32.mrf.mxu0 }
 0x2f9   :  { %2530 = shalt.err (!%p2527_p4)
}
 0x2fa   :  { %1928 = dma.vmem_to_hbm [thread:$0]  %s1926_s29, 32, %s3137_s7, [#allocation3]   ;;  %v2352_v14 = vpop.f32.mrf.mxu0 }
 0x2fb   :  { %2539 = dma.done.wait [#allocation3], 32  }
 0x2fc   :  { %2540 = vsyncadd [#allocation3], 4294967264 }
 0x2fd   :  { %1932 = vsyncpa [#allocation3], 1 }

</bundles_post_ra>
